<compile_context>
chip_gen: v7x
topology: tpu7x:2x2x1
jax: 0.10.0
libtpu: 0.0.40
codegen_flags: <defaults>
</compile_context>

<pallas_src>
import math

import jax
import jax.numpy as jnp
from jax.experimental import pallas as pl
from jax.experimental.pallas import tpu as pltpu


# ----------------------------------------------------------------------------
# Kernels
# ----------------------------------------------------------------------------

def _rope_cf_kernel(x_ref, cos_ref, sin_ref, o_ref):
    """Channel-first path. Blocks: x/o (1, C, T); cos/sin (C, T).

    out[:half] = x1 * cos1 - x2 * sin1
    out[half:] = x2 * cos2 + x1 * sin2
    (identical to t*cos + rotate_half(t)*sin, no concatenate / lane shuffles)
    """
    x = x_ref[0]                     # (C, T)
    c = cos_ref[...]                 # (C, T)
    s = sin_ref[...]                 # (C, T)
    half = x.shape[0] // 2
    x1 = x[:half]
    x2 = x[half:]
    o_ref[0, :half, :] = x1 * c[:half] - x2 * s[:half]
    o_ref[0, half:, :] = x2 * c[half:] + x1 * s[half:]


def _rope_cl_kernel(x_ref, cos_ref, sin_ref, o_ref):
    """Channel-last path. Blocks: x/o (1, T, C); cos/sin (T, C)."""
    x = x_ref[0]                     # (T, C)
    c = cos_ref[...]
    s = sin_ref[...]
    half = x.shape[-1] // 2
    x1 = x[:, :half]
    x2 = x[:, half:]
    o_ref[0, :, :half] = x1 * c[:, :half] - x2 * s[:, :half]
    o_ref[0, :, half:] = x2 * c[:, half:] + x1 * s[:, half:]


# ----------------------------------------------------------------------------
# Tiling helpers / wrappers
# ----------------------------------------------------------------------------

def _pick_spatial_tile(n_rows, other_dim, itemsize, align, target_bytes=1 << 20):
    """Largest tile along the streamed spatial axis that divides n_rows, keeps
    one activation block under ~target_bytes, and prefers `align` multiples
    (lane/sublane density)."""
    max_rows = max(1, target_bytes // max(1, other_dim * itemsize))
    if n_rows <= max_rows:
        return n_rows
    t = (min(n_rows, max_rows) // align) * align
    while t >= align:
        if n_rows % t == 0:
            return t
        t -= align
    # No aligned divisor; fall back to any divisor (still correct).
    t = min(n_rows, max_rows)
    while t > 1:
        if n_rows % t == 0:
            return t
        t -= 1
    return n_rows  # pathological (prime-ish) spatial size: single block


def _compiler_params(block_bytes):
    vmem_limit = int(min(48 * 1024 * 1024, max(32 * 1024 * 1024, 24 * block_bytes)))
    return pltpu.CompilerParams(
        dimension_semantics=("parallel", "parallel"),
        vmem_limit_bytes=vmem_limit,
    )


def grid_rope_apply_cf(x_bcs, cos_cs, sin_cs):
    """Channel-first apply. x_bcs: (B, C, S); cos/sin: (C, S)."""
    B, C, S = x_bcs.shape
    itemsize = jnp.dtype(x_bcs.dtype).itemsize
    t = _pick_spatial_tile(S, C, itemsize, align=128)
    n_s = S // t
    return pl.pallas_call(
        _rope_cf_kernel,
        out_shape=jax.ShapeDtypeStruct((B, C, S), x_bcs.dtype),
        grid_spec=pltpu.PrefetchScalarGridSpec(
            num_scalar_prefetch=0,
            # spatial tiles outer, batch inner -> cos/sin fetched once per tile
            grid=(n_s, B),
            in_specs=[
                pl.BlockSpec((1, C, t), lambda s, b: (b, 0, s)),  # activations
                pl.BlockSpec((C, t), lambda s, b: (0, s)),        # cos (batch-invariant)
                pl.BlockSpec((C, t), lambda s, b: (0, s)),        # sin (batch-invariant)
            ],
            out_specs=pl.BlockSpec((1, C, t), lambda s, b: (b, 0, s)),
        ),
        compiler_params=_compiler_params(C * t * itemsize),
    )(x_bcs, cos_cs, sin_cs)


def grid_rope_apply_cl(x_bsc, cos_sc, sin_sc):
    """Channel-last apply. x_bsc: (B, S, C); cos/sin: (S, C)."""
    B, S, C = x_bsc.shape
    itemsize = jnp.dtype(x_bsc.dtype).itemsize
    t = _pick_spatial_tile(S, C, itemsize, align=8)
    n_s = S // t
    return pl.pallas_call(
        _rope_cl_kernel,
        out_shape=jax.ShapeDtypeStruct((B, S, C), x_bsc.dtype),
        grid_spec=pltpu.PrefetchScalarGridSpec(
            num_scalar_prefetch=0,
            grid=(n_s, B),
            in_specs=[
                pl.BlockSpec((1, t, C), lambda s, b: (b, s, 0)),
                pl.BlockSpec((t, C), lambda s, b: (s, 0)),
                pl.BlockSpec((t, C), lambda s, b: (s, 0)),
            ],
            out_specs=pl.BlockSpec((1, t, C), lambda s, b: (b, s, 0)),
        ),
        compiler_params=_compiler_params(C * t * itemsize),
    )(x_bsc, cos_sc, sin_sc)


# ----------------------------------------------------------------------------
# Module
# ----------------------------------------------------------------------------

class GridRotaryEmbedding:
    """JAX port of the PyTorch GridRotaryEmbedding module."""

    def __init__(self, dim, pt_height=224, pt_width=224, ft_height=None, ft_width=None,
                 custom_freqs=None, max_freq=10.0):
        if dim % 2 != 0:
            raise ValueError("dim must be even for RoPE")
        self.dim = dim
        ft_h = ft_height if ft_height is not None else pt_height
        ft_w = ft_width if ft_width is not None else pt_width
        self.h = ft_h
        self.w = ft_w

        if custom_freqs is not None:
            base_freqs = jnp.asarray(custom_freqs, dtype=jnp.float32)
        else:
            base_freqs = jnp.linspace(1.0, max_freq / 2.0, dim // 2, dtype=jnp.float32) * math.pi

        t_h = jnp.arange(ft_h, dtype=jnp.float32) / ft_h * pt_height
        t_w = jnp.arange(ft_w, dtype=jnp.float32) / ft_w * pt_width
        freqs_h = t_h[:, None] * base_freqs[None, :]           # (h, dim//2)
        freqs_w = t_w[:, None] * base_freqs[None, :]           # (w, dim//2)
        phase = freqs_h[:, None, :] + freqs_w[None, :, :]      # (h, w, dim//2)
        # einops repeat 'h w n -> h w (n r)', r=2 == adjacent (interleaved) repeat.
        phase_rep = jnp.repeat(phase, 2, axis=-1)               # (h, w, dim)

        cos_hwd = jnp.cos(phase_rep)                             # (h, w, dim) f32
        sin_hwd = jnp.sin(phase_rep)

        # Module buffers (same shape as the PyTorch register_buffers).
        self.freqs_cos = cos_hwd[None]                           # (1, h, w, dim)
        self.freqs_sin = sin_hwd[None]

        # Channel-first master tables (dim, h*w) for the NCHW fast path.
        self._cos_cf32 = jnp.transpose(cos_hwd, (2, 0, 1)).reshape(dim, ft_h * ft_w)
        self._sin_cf32 = jnp.transpose(sin_hwd, (2, 0, 1)).reshape(dim, ft_h * ft_w)
        # Channel-last master tables (h*w, dim) for NHWC inputs.
        self._cos_cl32 = cos_hwd.reshape(ft_h * ft_w, dim)
        self._sin_cl32 = sin_hwd.reshape(ft_h * ft_w, dim)

        # Tables pre-cast to the activation dtype, cached so the cast happens once.
        self._table_cache = {}

    def _tables(self, layout, dtype):
        key = (layout, jnp.dtype(dtype).name)
        if key not in self._table_cache:
            if layout == "cf":
                c, s = self._cos_cf32, self._sin_cf32
            else:
                c, s = self._cos_cl32, self._sin_cl32
            self._table_cache[key] = (c.astype(dtype), s.astype(dtype))
        return self._table_cache[key]

    def __call__(self, t: jax.Array) -> jax.Array:
        h, w, dim = self.h, self.w, self.dim
        if t.ndim != 4:
            raise ValueError(f"Expected a 4D tensor, got shape {t.shape}")
        B = t.shape[0]

        if t.shape[1] == dim and t.shape[2] == h and t.shape[3] == w:
            # NCHW input: compute directly in channel-first layout (no transposes).
            cos, sin = self._tables("cf", t.dtype)
            x = t.reshape(B, dim, h * w)              # free reshape (merge trailing dims)
            out = grid_rope_apply_cf(x, cos, sin)
            return out.reshape(B, dim, h, w)

        if t.shape[1] == h and t.shape[2] == w and t.shape[3] == dim:
            # NHWC input: compute directly in channel-last layout.
            cos, sin = self._tables("cl", t.dtype)
            x = t.reshape(B, h * w, dim)
            out = grid_rope_apply_cl(x, cos, sin)
            return out.reshape(B, h, w, dim)

        raise ValueError(
            f"Input shape {t.shape} incompatible with RoPE module; expected "
            f"(B, {dim}, {h}, {w}) or (B, {h}, {w}, {dim}).")


# ----------------------------------------------------------------------------
# Pure-JAX reference (mirrors the PyTorch forward) and self-test
# ----------------------------------------------------------------------------

def _reference_forward(rope: GridRotaryEmbedding, x_nchw: jax.Array) -> jax.Array:
    t = jnp.transpose(x_nchw, (0, 2, 3, 1))
    half = t.shape[-1] // 2
    rot = jnp.concatenate([-t[..., half:], t[..., :half]], axis=-1)
    out = t * rope.freqs_cos + rot * rope.freqs_sin
    return jnp.transpose(out, (0, 3, 1, 2))


if __name__ == "__main__":
    # Small, module-consistent shapes: batch=2, dim(channels)=32, H=W=16.
    B, C, H, W = 2, 32, 16, 16
    key = jax.random.PRNGKey(0)
    k1, k2 = jax.random.split(key)

    rope = GridRotaryEmbedding(dim=C, pt_height=H, pt_width=W)

    # NCHW path (the PyTorch-style layout; channel-first kernel, no transposes).
    x_nchw = jax.random.normal(k1, (B, C, H, W), dtype=jnp.float32)
    out = jax.block_until_ready(rope(x_nchw))
    ref = _reference_forward(rope, x_nchw)
    assert out.shape == (B, C, H, W)
    assert out.dtype == x_nchw.dtype
    assert jnp.allclose(out, ref, atol=1e-5, rtol=1e-5), "NCHW Pallas output mismatch"

    # NHWC path (already channel-last; channel-last kernel, no transposes).
    x_nhwc = jax.random.normal(k2, (B, H, W, C), dtype=jnp.float32)
    out_cl = jax.block_until_ready(rope(x_nhwc))
    half = C // 2
    rot_cl = jnp.concatenate([-x_nhwc[..., half:], x_nhwc[..., :half]], axis=-1)
    ref_cl = x_nhwc * rope.freqs_cos + rot_cl * rope.freqs_sin
    assert jnp.allclose(out_cl, ref_cl, atol=1e-5, rtol=1e-5), "NHWC Pallas output mismatch"

    print("KERNEL_OK")
</pallas_src>

<mosaic_0001>
module attributes {stable_mosaic.version = 11 : i64} {
  func.func @_rope_cf_kernel(%arg0: i32, %arg1: i32, %arg2: memref<1x32x256xf32, #tpu.memory_space<vmem>>, %arg3: memref<32x256xf32, #tpu.memory_space<vmem>>, %arg4: memref<32x256xf32, #tpu.memory_space<vmem>>, %arg5: memref<1x32x256xf32, #tpu.memory_space<vmem>>) attributes {dimension_semantics = [#tpu.dimension_semantics<parallel>, #tpu.dimension_semantics<parallel>], iteration_bounds = array<i64: 1, 2>, scalar_prefetch = 0 : i64, scratch_operands = 0 : i64, tpu.core_type = #tpu.core_type<tc>, window_params = [{transform_indices = @transform_0, window_bounds = array<i64: 1, 32, 256>}, {transform_indices = @transform_1, window_bounds = array<i64: 32, 256>}, {transform_indices = @transform_2, window_bounds = array<i64: 32, 256>}, {transform_indices = @transform_3, window_bounds = array<i64: 1, 32, 256>}]} {
    %c0 = arith.constant 0 : index
    %c0_0 = arith.constant 0 : index
    %c0_1 = arith.constant 0 : index
    %0 = vector.load %arg2[%c0, %c0_0, %c0_1] : memref<1x32x256xf32, #tpu.memory_space<vmem>>, vector<1x32x256xf32>
    %1 = vector.shape_cast %0 : vector<1x32x256xf32> to vector<32x256xf32>
    %c0_2 = arith.constant 0 : index
    %c0_3 = arith.constant 0 : index
    %2 = vector.load %arg3[%c0_2, %c0_3] : memref<32x256xf32, #tpu.memory_space<vmem>>, vector<32x256xf32>
    %c0_4 = arith.constant 0 : index
    %c0_5 = arith.constant 0 : index
    %3 = vector.load %arg4[%c0_4, %c0_5] : memref<32x256xf32, #tpu.memory_space<vmem>>, vector<32x256xf32>
    %4 = vector.extract_strided_slice %1 {offsets = [0, 0], sizes = [16, 256], strides = [1, 1]} : vector<32x256xf32> to vector<16x256xf32>
    %5 = vector.extract_strided_slice %1 {offsets = [16, 0], sizes = [16, 256], strides = [1, 1]} : vector<32x256xf32> to vector<16x256xf32>
    %6 = vector.extract_strided_slice %2 {offsets = [0, 0], sizes = [16, 256], strides = [1, 1]} : vector<32x256xf32> to vector<16x256xf32>
    %7 = arith.mulf %4, %6 : vector<16x256xf32>
    %8 = vector.extract_strided_slice %3 {offsets = [0, 0], sizes = [16, 256], strides = [1, 1]} : vector<32x256xf32> to vector<16x256xf32>
    %9 = arith.mulf %5, %8 : vector<16x256xf32>
    %10 = arith.subf %7, %9 : vector<16x256xf32>
    %c0_6 = arith.constant 0 : index
    %c0_7 = arith.constant 0 : index
    %c0_8 = arith.constant 0 : index
    %11 = vector.load %arg5[%c0_6, %c0_7, %c0_8] : memref<1x32x256xf32, #tpu.memory_space<vmem>>, vector<1x16x256xf32>
    %12 = vector.shape_cast %11 : vector<1x16x256xf32> to vector<16x256xf32>
    %13 = vector.shape_cast %10 : vector<16x256xf32> to vector<1x16x256xf32>
    tpu.vector_store %arg5[%c0_6, %c0_7, %c0_8], %13 {strides = array<i32>} : memref<1x32x256xf32, #tpu.memory_space<vmem>>, vector<1x16x256xf32>,
    %14 = vector.extract_strided_slice %2 {offsets = [16, 0], sizes = [16, 256], strides = [1, 1]} : vector<32x256xf32> to vector<16x256xf32>
    %15 = arith.mulf %5, %14 : vector<16x256xf32>
    %16 = vector.extract_strided_slice %3 {offsets = [16, 0], sizes = [16, 256], strides = [1, 1]} : vector<32x256xf32> to vector<16x256xf32>
    %17 = arith.mulf %4, %16 : vector<16x256xf32>
    %18 = arith.addf %15, %17 : vector<16x256xf32>
    %c0_9 = arith.constant 0 : index
    %c16 = arith.constant 16 : index
    %c0_10 = arith.constant 0 : index
    %19 = vector.load %arg5[%c0_9, %c16, %c0_10] : memref<1x32x256xf32, #tpu.memory_space<vmem>>, vector<1x16x256xf32>
    %20 = vector.shape_cast %19 : vector<1x16x256xf32> to vector<16x256xf32>
    %21 = vector.shape_cast %18 : vector<16x256xf32> to vector<1x16x256xf32>
    tpu.vector_store %arg5[%c0_9, %c16, %c0_10], %21 {strides = array<i32>} : memref<1x32x256xf32, #tpu.memory_space<vmem>>, vector<1x16x256xf32>,
    return
  }
  func.func @transform_0(%arg0: i32, %arg1: i32) -> (i32, i32, i32) {
    %c0_i32 = arith.constant 0 : i32
    %c0_i32_0 = arith.constant 0 : i32
    return %arg1, %c0_i32, %arg0 : i32, i32, i32
  }
  func.func @transform_1(%arg0: i32, %arg1: i32) -> (i32, i32) {
    %c0_i32 = arith.constant 0 : i32
    %c0_i32_0 = arith.constant 0 : i32
    return %c0_i32, %arg0 : i32, i32
  }
  func.func @transform_2(%arg0: i32, %arg1: i32) -> (i32, i32) {
    %c0_i32 = arith.constant 0 : i32
    %c0_i32_0 = arith.constant 0 : i32
    return %c0_i32, %arg0 : i32, i32
  }
  func.func @transform_3(%arg0: i32, %arg1: i32) -> (i32, i32, i32) {
    %c0_i32 = arith.constant 0 : i32
    %c0_i32_0 = arith.constant 0 : i32
    return %arg1, %c0_i32, %arg0 : i32, i32, i32
  }
}

</mosaic_0001>

<bundles_post_ra>
// kernel: tpu_custom_call.1
= control target key start
LH: loop header
LB: loop body
LE: loop exit
PB: predicated region body
PF: predicated region fallthrough
CT: control target
= control target key end

     0   :  { %8 = vsyncpa [#allocation3], 0  ;;  %s1027_s0 = inlined_call_operand.hbm [shape: f32[2,32,256], index: 0, kind: input, shape index: {}]   ;;  %s1028_s1 = inlined_call_operand.hbm [shape: f32[32,256], index: 1, kind: input, shape index: {}]   ;;  %s1029_s2 = inlined_call_operand.hbm [shape: f32[32,256], index: 2, kind: input, shape index: {}]   ;;  %s1030_s3 = inlined_call_operand.hbm [shape: f32[2,32,256], index: 3, kind: output, shape index: {}]  }
   0x1   :  { %10 = vsyncpa [#allocation3 + $0x1], 0 }
   0x2   :  { %11 = vsyncpa [#allocation6], 0 }
   0x3   :  { %12 = vsyncpa [#allocation4], 0 }
   0x4   :  { %14 = vsyncpa [#allocation4 + $0x1], 0  ;;  %s748_s12 = smov 0   ;;  %s750_s13 = smov 0  }
   0x5   :  { %s752_s14 = smov 0   ;;  %s754_s15 = smov 0  }
   0x6   :  { %s756_s16 = smov 0   ;;  %s758_s17 = smov 0  }
   0x7 LB: > { %s438_s18 = sadd.s32 4294967295, %s718_s17   ;;  %s439_s19 = sadd.s32 4294967294, %s718_s17   ;;  %s718_s17 = sphi %s758_s17, %s20_s17   ;;  %s714_s16 = sphi %s756_s16, %s1052_s16   ;;  %s710_s15 = sphi %s754_s15, %s1051_s15   ;;  %s706_s14 = sphi %s752_s14, %s1050_s14   ;;  %s702_s13 = sphi %s750_s13, %s1049_s13   ;;  %s698_s12 = sphi %s748_s12, %s1048_s12  }
   0x8   : > { %p54_p0 = scmp.ne.s32.totalorder %s702_s13, %s698_s12  ;;  %p782_p1 = scmp.eq.s32.totalorder %s438_s18, 0 }
   0x9   : > { %p786_p2 = scmp.eq.s32.totalorder %s438_s18, 1  ;;  %p138_p3 = scmp.eq.s32.totalorder %s439_s19, 1 }
   0xa   : > { %s1035_s20 = scalar_select %p782_p1, 1, 0 }
   0xb   : > { %p792_p4 = por %p782_p1, %p54_p0  ;;  %p440_p5 = scmp.ge.s32.totalorder %s718_s17, 1 }
   0xc   : > { %p797_p6 = por %p138_p3, %p54_p0  ;;  %p145_p7 = scmp.lt.s32.totalorder %s718_s17, 3 }
   0xd   : > { %s1037_s22 = scalar_select %p792_p4, 1, 0 }
   0xe   : > { %s1038_s23 = scalar_select %p797_p6, 1, 0 }
   0xf   : > { %p802_p8 = pnand %p440_p5, %p145_p7  ;;  %s720_s25 = smov [#allocation5]  }
  0x10   : > { %s160_s26 = sshll.u32 %s720_s25, 4  ;;  %s721_s28 = smov [#allocation7]   ;;  %s806_s26 = int_to_ptr.vmem [resolvable:$true] %s160_s26 }
  0x11   : > { %p471_p9 = pneg %p802_p8  ;;  %s176_s29 = sshll.u32 %s721_s28, 4  ;;  %s817_s29 = int_to_ptr.vmem [resolvable:$true] %s176_s29 }
  0x12   : > { %s546_s5 = scalar_lea.hbm %s1028_s1, 1024 }
  0x13   : > { %p813_p11 = pnand %p471_p9, %p782_p1  ;;  %p547_p12 = scmp.ne.s32.totalorder %s1028_s1, %s546_s5 }
  0x14   : > { %p553_p5 = scmp.lt.u32.totalorder %s546_s5, %s1028_s1 }
  0x15   : > { %p548_p13 = pneg %p813_p11 }
  0x17   : > { %p549_p0 = pnand %p548_p13, %p547_p12 }
  0x19   : > { %p550_p3 = pneg %p549_p0 }
  0x1b   : > { %p555_p7 = pnand %p553_p5, %p550_p3 }
  0x1d   : > { %558 = shalt.err (!%p555_p7)
}
  0x1e   : > { %s559_s10 = scalar_lea.vmem %s806_s26, 1024  ;;  %p567_p1 = scmp.lt.s32.totalorder %s806_s26, %s806_s26 }
  0x1f   : > { %p560_p9 = scmp.ne.s32.totalorder %s806_s26, %s559_s10  ;;  %p568_p12 = scmp.lt.s32.totalorder %s559_s10, %s559_s10 }
  0x21   : > { %p562_p10 = pnand %p560_p9, %p548_p13  ;;  %p569_p0 = por %p568_p12, %p567_p1 }
  0x23   : > { %p563_p6 = pneg %p562_p10 }
  0x25   : > { %p570_p4 = pnand %p569_p0, %p563_p6 }
  0x27   : > { %573 = shalt.err (!%p570_p4)
}
  0x28   : > { %s722_s11 = smov 256   ;;  %s723_s18 = smov 16  }
  0x29   : > { %474 = dma.hbm_to_vmem [thread:$0]  (!%p813_p11), %s1028_s1, 1024, %s806_s26, [#allocation6], %s722_s11, %s722_s11, %s723_s18  }
  0x2a   : > { %s574_s4 = scalar_lea.hbm %s1029_s2, 1024 }
  0x2b   : > { %p575_p1 = scmp.ne.s32.totalorder %s1029_s2, %s574_s4  ;;  %p581_p10 = scmp.lt.u32.totalorder %s574_s4, %s1029_s2 }
  0x2d   : > { %p577_p4 = pnand %p575_p1, %p548_p13 }
  0x2f   : > { %p578_p6 = pneg %p577_p4 }
  0x31   : > { %p583_p3 = pnand %p581_p10, %p578_p6 }
  0x33   : > { %586 = shalt.err (!%p583_p3)
}
  0x34   : > { %s587_s26 = scalar_lea.vmem %s817_s29, 1024  ;;  %p595_p12 = scmp.lt.s32.totalorder %s817_s29, %s817_s29 }
  0x35   : > { %p588_p5 = scmp.ne.s32.totalorder %s817_s29, %s587_s26  ;;  %p596_p0 = scmp.lt.s32.totalorder %s587_s26, %s587_s26 }
  0x37   : > { %p590_p7 = pnand %p588_p5, %p548_p13  ;;  %p597_p1 = por %p596_p0, %p595_p12 }
  0x39   : > { %p591_p9 = pneg %p590_p7 }
  0x3b   : > { %p598_p4 = pnand %p597_p1, %p591_p9 }
  0x3d   : > { %601 = shalt.err (!%p598_p4)
}
  0x3e   : > { %477 = dma.hbm_to_vmem [thread:$0]  (!%p813_p11), %s1029_s2, 1024, %s817_s29, [#allocation6], %s722_s11, %s722_s11, %s723_s18  }
  0x3f   : > { %s29_s27 = sadd.s32 1, %s714_s16  ;;  %s41_s19 = sadd.s32 1, %s706_s14 }
  0x40   : > { %p30_p13 = scmp.ge.s32.totalorder %s29_s27, 2  ;;  %p48_p6 = scmp.ne.s32.totalorder %s706_s14, %s702_s13 }
  0x41   : > { %p49_p10 = scmp.eq.s32.totalorder %s718_s17, 0  ;;  %p488_p3 = scmp.lt.s32.totalorder %s718_s17, 2 }
  0x42   : > { %s1054_s27 = smov (%p30_p13, %s29_s27), 0  ;;  %p887_p7 = por %p786_p2, %p48_p6 }
  0x43   : > { %p50_p5 = por %p49_p10, %p48_p6  ;;  %s36_s28 = ssub.s32 %s714_s16, %s1054_s27 }
  0x44   : > { %s1041_s25 = scalar_select %p887_p7, 1, 0 }
  0x45   : > { %s190_s30 = sand.u32 1, %s706_s14   ;;  %p39_p9 = scmp.eq.s32.totalorder %s36_s28, 0 }
  0x46   : > { %s444_s29 = sshll.u32 %s190_s30, 6  ;;  %s457_s4 = sshll.u32 %s714_s16, 10 }
  0x47   : > { %s896_s5 = scalar_select %p39_p9, %s706_s14, %s41_s19  }
  0x48   : > { %s901_s8 = scalar_lea.hbm %s1027_s0, %s457_s4  ;;  %s194_s21 = scalar_lea.vmem [#allocation2], %s444_s29 }
  0x49   : > { %s203_s26 = sshll.u32 %s194_s21, 4  ;;  %p905_p2 = pnand %p488_p3, %p50_p5  ;;  %s909_s26 = int_to_ptr.vmem [resolvable:$true] %s203_s26 }
  0x4a   : > { %s911_s10 = scalar_lea.sflag [#allocation3], %s190_s30  ;;  %s602_s19 = scalar_lea.hbm %s901_s8, 1024 }
  0x4b   : > { %p603_p11 = scmp.ne.s32.totalorder %s901_s8, %s602_s19  ;;  %p604_p12 = pneg %p905_p2 }
  0x4c   : > { %s607_s4 = scalar_lea.hbm %s1027_s0, 2048  ;;  %p608_p4 = scmp.lt.u32.totalorder %s901_s8, %s1027_s0 }
  0x4d   : > { %p605_p0 = pnand %p604_p12, %p603_p11  ;;  %p609_p13 = scmp.lt.u32.totalorder %s607_s4, %s602_s19 }
  0x4e   : > { %p611_p10 = scmp.lt.u32.totalorder %s602_s19, %s901_s8 }
  0x4f   : > { %p606_p1 = pneg %p605_p0  ;;  %p610_p6 = por %p609_p13, %p608_p4 }
  0x51   : > { %p612_p3 = por %p611_p10, %p610_p6 }
  0x53   : > { %p613_p5 = pnand %p612_p3, %p606_p1 }
  0x55   : > { %616 = shalt.err (!%p613_p5)
}
  0x56   : > { %s617_s30 = scalar_lea.vmem %s909_s26, 1024  ;;  %s724_s21 = smov [#allocation2]  }
  0x57   : > { %p618_p9 = scmp.ne.s32.totalorder %s909_s26, %s617_s30  ;;  %s622_s28 = sshll.u32 %s724_s21, 4  ;;  %s623_s28 = int_to_ptr.vmem [resolvable:$false] %s622_s28 }
  0x58   : > { %s624_s29 = scalar_lea.vmem %s623_s28, 2048  ;;  %p625_p7 = scmp.lt.s32.totalorder %s909_s26, %s623_s28 }
  0x59   : > { %p620_p11 = pnand %p618_p9, %p604_p12  ;;  %p626_p4 = scmp.lt.s32.totalorder %s624_s29, %s617_s30 }
  0x5b   : > { %p621_p0 = pneg %p620_p11  ;;  %p627_p13 = por %p626_p4, %p625_p7 }
  0x5d   : > { %p628_p6 = pnand %p627_p13, %p621_p0 }
  0x5f   : > { %631 = shalt.err (!%p628_p6)
}
  0x60   : > { %481 = dma.hbm_to_vmem [thread:$0]  (!%p905_p2), %s901_s8, 1024, %s909_s26, %s911_s10, %s722_s11, %s722_s11, %s723_s18  }
  0x61   : > { %215 = sbr.rel (%p802_p8) target bundleno = 137 (0x89), region = 32  ;;  %s945_s19 = sand.u32 (!%p802_p8), 1, %s702_s13  }
  0x62   : > { %s448_s4 = sshll.u32 (!%p802_p8), %s945_s19, 6  ;;  %s218_s6 = scalar_lea.sflag (!%p802_p8), [#allocation3], %s945_s19 }
  0x63   : > { %s221_s9 = scalar_lea.vmem (!%p802_p8), [#allocation2], %s448_s4  ;;  %p1043_p7 = scmp.ne.s32.totalorder (!%p802_p8), %s1037_s22, 0 }
  0x68   : > { %685 = dma.done.wait (%p1043_p7), %s218_s6, 1024  }
  0x69   : > { %687 = vsyncadd (%p1043_p7), %s218_s6, 4294966272  ;;  %p1044_p2 = scmp.ne.s32.totalorder %s1035_s20, 0 }
  0x6b   : > { %689 = dma.done.wait (%p1044_p2), [#allocation6], 2048  }
  0x6c   : > { %691 = vsyncadd (%p1044_p2), [#allocation6], 4294965248  ;;  %v256_v0 = vld [vmem:[%s221_s9] sm:$0xff]  ;;  %v257_v5 = vld [vmem:[%s221_s9 + $0x8] sm:$0xff]  ;;  %s961_s20 = scalar_lea.vmem [#allocation8], %s448_s4  ;;  %s458_s24 = sshll.u32 %s710_s15, 10 }
  0x6d   : > { %v260_v1 = vld [vmem:[%s221_s9 + $0x20] sm:$0xff]  ;;  %v261_v6 = vld [vmem:[%s221_s9 + $0x28] sm:$0xff]  ;;  %v258_v10 = vld [vmem:[%s221_s9 + $0x10] sm:$0xff]  ;;  %s328_s22 = sshll.u32 %s961_s20, 4  ;;  %s975_s18 = scalar_lea.hbm %s1030_s3, %s458_s24  ;;  %s968_s22 = int_to_ptr.vmem [resolvable:$true] %s328_s22 }
  0x6e   : > { %v264_v2 = vld [vmem:[#allocation5] sm:$0xff]  ;;  %v265_v8 = vld [vmem:[#allocation5 + $0x8] sm:$0xff]  ;;  %v262_v13 = vld [vmem:[%s221_s9 + $0x30] sm:$0xff]  ;;  %s313_s8 = scalar_lea.sflag [#allocation4], %s945_s19  ;;  %s632_s26 = scalar_lea.vmem %s968_s22, 1024 }
  0x6f   : > { %v272_v3 = vld [vmem:[#allocation7] sm:$0xff]  ;;  %v280_v4 = vmul.f32 %v264_v2, %v256_v0  ;;  %v273_v9 = vld [vmem:[#allocation7 + $0x8] sm:$0xff]  ;;  %v281_v11 = vmul.f32 %v265_v8, %v257_v5  ;;  %v266_v14 = vld [vmem:[#allocation5 + $0x10] sm:$0xff]  ;;  %p633_p8 = scmp.ne.s32.totalorder %s968_s22, %s632_s26  ;;  %p1045_p12 = scmp.ne.s32.totalorder %s1041_s25, 0 }
  0x70   : > { %v284_v7 = vmul.f32 %v272_v3, %v260_v1  ;;  %v285_v12 = vmul.f32 %v273_v9, %v261_v6  ;;  %v274_v15 = vld [vmem:[#allocation7 + $0x10] sm:$0xff]  ;;  %v282_v17 = vmul.f32 %v266_v14, %v258_v10  ;;  %v259_v19 = vld [vmem:[%s221_s9 + $0x18] sm:$0xff]  ;;  %v268_v25 = vld [vmem:[#allocation5 + $0x20] sm:$0xff]  ;;  %s725_s10 = smov [#allocation8]  }
  0x71   : > { %v286_v18 = vmul.f32 %v274_v15, %v262_v13  ;;  %v263_v20 = vld [vmem:[%s221_s9 + $0x38] sm:$0xff]  ;;  %v276_v26 = vld [vmem:[#allocation7 + $0x20] sm:$0xff]  ;;  %v296_v29 = vmul.f32 %v268_v25, %v260_v1  ;;  %v269_v31 = vld [vmem:[#allocation5 + $0x28] sm:$0xff]  ;;  %p634_p1 = pnand %p633_p8, %p1045_p12  ;;  %s636_s7 = sshll.u32 %s725_s10, 4  ;;  %s637_s7 = int_to_ptr.vmem [resolvable:$false] %s636_s7 }
  0x72   : > { %v288_v16 = vsub.f32 %v280_v4, %v284_v7  ;;  %v267_v21 = vld [vmem:[#allocation5 + $0x18] sm:$0xff]  ;;  %v289_v22 = vsub.f32 %v281_v11, %v285_v12  ;;  %v300_v30 = vmul.f32 %v276_v26, %v256_v0  ;;  %v277_v32 = vld [vmem:[#allocation7 + $0x28] sm:$0xff]  ;;  %v270_v33 = vld [vmem:[#allocation5 + $0x30] sm:$0xff]  ;;  %v297_v34 = vmul.f32 %v269_v31, %v261_v6  ;;  %s638_s30 = scalar_lea.vmem %s637_s7, 2048  ;;  %p639_p3 = scmp.lt.s32.totalorder %s968_s22, %s637_s7 }
  0x73   : > { %v275_v23 = vld [vmem:[#allocation7 + $0x18] sm:$0xff]  ;;  %v283_v24 = vmul.f32 %v267_v21, %v259_v19  ;;  %v290_v27 = vsub.f32 %v282_v17, %v286_v18  ;;  %v301_v35 = vmul.f32 %v277_v32, %v257_v5  ;;  %v278_v36 = vld [vmem:[#allocation7 + $0x30] sm:$0xff]  ;;  %v298_v37 = vmul.f32 %v270_v33, %v262_v13  ;;  %p635_p10 = pneg %p634_p1  ;;  %p640_p5 = scmp.lt.s32.totalorder %s638_s30, %s632_s26 }
  0x74   : > { %292 = vst [vmem:[%s961_s20] sm:$0xff] %v288_v16  ;;  %v287_v28 = vmul.f32 %v275_v23, %v263_v20  ;;  %293 = vst [vmem:[%s961_s20 + $0x8] sm:$0xff] %v289_v22  ;;  %v271_v38 = vld [vmem:[#allocation5 + $0x38] sm:$0xff]  ;;  %v304_v41 = vadd.f32 %v300_v30, %v296_v29  ;;  %v302_v42 = vmul.f32 %v278_v36, %v258_v10 }
  0x75   : > { %v279_v39 = vld [vmem:[#allocation7 + $0x38] sm:$0xff]  ;;  %294 = vst [vmem:[%s961_s20 + $0x10] sm:$0xff] %v290_v27  ;;  %v299_v43 = vmul.f32 %v271_v38, %v263_v20  ;;  %v305_v44 = vadd.f32 %v301_v35, %v297_v34  ;;  %p641_p9 = por %p640_p5, %p639_p3 }
  0x76   : > { %v291_v40 = vsub.f32 %v283_v24, %v287_v28  ;;  %v303_v45 = vmul.f32 %v279_v39, %v259_v19  ;;  %308 = vst [vmem:[%s961_s20 + $0x20] sm:$0xff] %v304_v41  ;;  %v306_v46 = vadd.f32 %v302_v42, %v298_v37 }
  0x77   : > { %309 = vst [vmem:[%s961_s20 + $0x28] sm:$0xff] %v305_v44  ;;  %p642_p11 = pnand %p641_p9, %p635_p10 }
  0x78   : > { %295 = vst [vmem:[%s961_s20 + $0x18] sm:$0xff] %v291_v40  ;;  %v307_v47 = vadd.f32 %v303_v45, %v299_v43  ;;  %310 = vst [vmem:[%s961_s20 + $0x30] sm:$0xff] %v306_v46 }
  0x7a   : > { %311 = vst [vmem:[%s961_s20 + $0x38] sm:$0xff] %v307_v47 }
  0x7b   : > { %645 = shalt.err (!%p642_p11)
}
  0x7c   : > { %s646_s21 = scalar_lea.hbm %s975_s18, 1024  ;;  %s650_s4 = scalar_lea.hbm %s1030_s3, 2048 }
  0x7d   : > { %p647_p0 = scmp.ne.s32.totalorder %s975_s18, %s646_s21  ;;  %p651_p6 = scmp.lt.u32.totalorder %s975_s18, %s1030_s3 }
  0x7e   : > { %p652_p7 = scmp.lt.u32.totalorder %s650_s4, %s646_s21  ;;  %p654_p8 = scmp.lt.u32.totalorder %s646_s21, %s975_s18 }
  0x7f   : > { %p648_p4 = pnand %p647_p0, %p1045_p12 }
  0x80   : > { %p653_p2 = por %p652_p7, %p651_p6 }
  0x81   : > { %p649_p13 = pneg %p648_p4 }
  0x82   : > { %p655_p1 = por %p654_p8, %p653_p2 }
  0x84   : > { %p656_p10 = pnand %p655_p1, %p649_p13 }
  0x86   : > { %659 = shalt.err (!%p656_p10)
}
  0x87   : > { %s726_s20 = smov 256   ;;  %s727_s24 = smov 16  }
  0x88   : > { %469 = dma.vmem_to_hbm [thread:$0]  (%p1045_p12), %s968_s22, 1024, %s975_s18, %s313_s8, %s726_s20, %s726_s20, %s727_s24  }
  0x89 PF: > { %s343_s11 = sand.u32 1, %s698_s12   ;;  %p1046_p3 = scmp.ne.s32.totalorder %s1038_s23, 0 }
  0x8a   : > { %p1047_p5 = scmp.ge.s32.totalorder %s718_s17, 2  ;;  %s344_s15 = scalar_lea.sflag [#allocation4], %s343_s11 }
  0x8c   : > { %p483_p9 = pnand %p1047_p5, %p1046_p3 }
  0x8e   : > { %693 = dma.done.wait (!%p483_p9), %s344_s15, 1024  }
  0x8f   : > { %695 = vsyncadd (!%p483_p9), %s344_s15, 4294966272  ;;  %s20_s17 = sadd.s32 1, %s718_s17   ;;  %s1048_s12 = smov %s702_s13 }
  0x90   : > { %p17_p11 = scmp.ge.s32.totalorder %s20_s17, 4   ;;  %s1049_s13 = smov %s706_s14 }
  0x91   : > { %s1050_s14 = smov %s896_s5  ;;  %s1051_s15 = smov %s714_s16 }
  0x92   : > { %s1052_s16 = smov %s1054_s27  ;;  %19 = sbr.rel (!%p17_p11) target bundleno = 7 (0x7), region = 87 }
  0x99   :  { %349 = vsyncpa [#allocation3], 1 }
  0x9a   :  { %351 = vsyncpa [#allocation3 + $0x1], 1 }
  0x9b   :  { %352 = vsyncpa [#allocation6], 1 }
  0x9c   :  { %353 = vsyncpa [#allocation4], 1 }
  0x9d   :  { %355 = vsyncpa [#allocation4 + $0x1], 1 }

</bundles_post_ra>
